<compile_context>
chip_gen: v5e
topology: v5e:2x2
jax: 0.10.0
libtpu: 0.0.40
codegen_flags: <defaults>
</compile_context>

<pallas_src>
import functools

import jax
import jax.numpy as jnp
from jax import lax
from jax.experimental import pallas as pl
from jax.experimental.pallas import tpu as pltpu


def _round_up(x, m):
    return ((x + m - 1) // m) * m


def _char_rnn_kernel(x_ref, wih_ref, whh_ref, b_ref, wfc_ref, bfc_ref,
                     logits_ref, xw_ref, *, seq_len, batch_block):
    """One batch block of the RNN forward.

    x_ref:      (T, Bb, Ep) bf16   time-major block of embedded tokens
    wih_ref:    (Ep, Hp)    bf16
    whh_ref:    (Hp, Hp)    bf16
    b_ref:      (1, Hp)     f32    (b_ih + b_hh)
    wfc_ref:    (Hp, Vp)    bf16
    bfc_ref:    (1, Vp)     f32
    logits_ref: (Bb, Vp)    f32
    xw_ref:     (T, Bb, Hp) f32    VMEM scratch for the hoisted input projection
    """
    T, Bb = seq_len, batch_block
    Ep = x_ref.shape[-1]
    Hp = whh_ref.shape[0]

    # Hoisted input projection: one large matmul over all timesteps, bias added once.
    # Stored to an explicit VMEM scratch so the recurrence reads aligned per-step
    # tiles instead of keeping a (T*Bb, Hp) value live across the whole loop.
    x2d = x_ref[...].reshape(T * Bb, Ep)            # merge leading dims: layout-free
    xw_ref[...] = (jnp.dot(x2d, wih_ref[...], preferred_element_type=jnp.float32)
                   + b_ref[...]).reshape(T, Bb, Hp)

    whh = whh_ref[...]                              # resident across the recurrence
    # NOTE: explicit MXU weight pinning (pltpu.matmul_push_rhs once, matmul_acc_lhs
    # per step) is a further latency saving; verify from a bundle dump whether Mosaic
    # already hoists the weight push before hand-driving the MXU.

    h0 = jnp.zeros((Bb, Hp), dtype=jnp.float32)

    def step(t, h):
        pre = xw_ref[t] + jnp.dot(h.astype(whh.dtype), whh,
                                  preferred_element_type=jnp.float32)
        return jnp.tanh(pre)                        # f32 EUP tanh

    if T <= 16:
        h = h0
        for t in range(T):                          # fully unrolled: small static T
            h = step(t, h)
    else:
        # Modest unroll keeps scheduler visibility without inflating vreg live ranges.
        h = lax.fori_loop(0, T, step, h0, unroll=4)

    # Final Linear (epilogue): lane-dense (Bb, Vp) unmasked store.
    logits_ref[...] = (jnp.dot(h.astype(wfc_ref.dtype), wfc_ref[...],
                               preferred_element_type=jnp.float32)
                       + bfc_ref[...])


def char_rnn_forward(tokens, params, *, batch_block=256):
    """tokens: (B, T) int32. Returns logits (B, V) f32."""
    embed = params["embed"]          # (V, E)
    w_ih = params["w_ih"]            # (H, E)  (PyTorch layout)
    w_hh = params["w_hh"]            # (H, H)
    b_ih = params["b_ih"]            # (H,)
    b_hh = params["b_hh"]            # (H,)
    w_fc = params["w_fc"]            # (V, H)
    b_fc = params["b_fc"]            # (V,)

    B, T = tokens.shape
    V, E = embed.shape
    H = w_hh.shape[0]

    # Tile-aligned padded sizes (lane dim multiples of 128, sublane multiples of 8).
    Ep = _round_up(E, 128)
    Hp = _round_up(H, 128)
    Vp = _round_up(V, 128)

    # Batch block. Keep >= 2 blocks whenever the batch allows it so the single
    # "parallel" grid axis can feed both TensorCores on v7x.
    Bb = min(batch_block, _round_up(B, 8))
    if _round_up(B, 8) // Bb < 2 and Bb >= 16:
        Bb = _round_up(Bb // 2, 8)
    Bp = _round_up(B, Bb)
    nb = Bp // Bb

    # Glue: bf16 gather directly in time-major order (no activation transpose), pad.
    x = jnp.take(embed.astype(jnp.bfloat16), tokens.T, axis=0)       # (T, B, E) bf16
    x = jnp.pad(x, ((0, 0), (0, Bp - B), (0, Ep - E)))                # (T, Bp, Ep)

    # Pre-transpose / pad weights; fold the two RNN biases.
    wih_t = jnp.pad(w_ih.T, ((0, Ep - E), (0, Hp - H))).astype(jnp.bfloat16)  # (Ep, Hp)
    whh_t = jnp.pad(w_hh.T, ((0, Hp - H), (0, Hp - H))).astype(jnp.bfloat16)  # (Hp, Hp)
    b = jnp.pad((b_ih + b_hh).astype(jnp.float32), (0, Hp - H)).reshape(1, Hp)
    wfc_t = jnp.pad(w_fc.T, ((0, Hp - H), (0, Vp - V))).astype(jnp.bfloat16)  # (Hp, Vp)
    bfc = jnp.pad(b_fc.astype(jnp.float32), (0, Vp - V)).reshape(1, Vp)

    # Explicit VMEM budget: x block + weights double-buffered, f32 xw scratch,
    # output block double-buffered; 2x headroom, clamped to what every generation
    # (v7x: 64 MiB physical) can honor.
    x_blk = T * Bb * Ep * 2
    w_bytes = (Ep * Hp + Hp * Hp + Hp * Vp) * 2 + (Hp + Vp) * 4
    xw_bytes = T * Bb * Hp * 4
    out_blk = Bb * Vp * 4
    vmem_limit = int(min(max(2 * (2 * x_blk + 2 * w_bytes + xw_bytes + 2 * out_blk),
                             16 << 20), 64 << 20))

    kernel = functools.partial(_char_rnn_kernel, seq_len=T, batch_block=Bb)

    logits_p = pl.pallas_call(
        kernel,
        out_shape=jax.ShapeDtypeStruct((Bp, Vp), jnp.float32),
        grid=(nb,),
        in_specs=[
            # x: one time-major batch block per grid step.
            pl.BlockSpec((T, Bb, Ep), lambda i: (0, i, 0)),
            # Grid-invariant weights/biases: constant index_map, so Pallas does not
            # re-copy them between grid steps.
            pl.BlockSpec((Ep, Hp), lambda i: (0, 0)),
            pl.BlockSpec((Hp, Hp), lambda i: (0, 0)),
            pl.BlockSpec((1, Hp), lambda i: (0, 0)),
            pl.BlockSpec((Hp, Vp), lambda i: (0, 0)),
            pl.BlockSpec((1, Vp), lambda i: (0, 0)),
        ],
        out_specs=pl.BlockSpec((Bb, Vp), lambda i: (i, 0)),
        scratch_shapes=[pltpu.VMEM((T, Bb, Hp), jnp.float32)],
        compiler_params=pltpu.CompilerParams(
            dimension_semantics=("parallel",),   # batch blocks shard across TCs (v7x)
            vmem_limit_bytes=vmem_limit,
        ),
    )(x, wih_t, whh_t, b, wfc_t, bfc)

    return logits_p[:B, :V]


def init_params(key, vocab_size, embed_dim, hidden_dim):
    k = jax.random.split(key, 7)
    s = 1.0 / jnp.sqrt(hidden_dim)
    return {
        "embed": jax.random.normal(k[0], (vocab_size, embed_dim), jnp.float32),
        "w_ih": jax.random.uniform(k[1], (hidden_dim, embed_dim), jnp.float32, -s, s),
        "w_hh": jax.random.uniform(k[2], (hidden_dim, hidden_dim), jnp.float32, -s, s),
        "b_ih": jax.random.uniform(k[3], (hidden_dim,), jnp.float32, -s, s),
        "b_hh": jax.random.uniform(k[4], (hidden_dim,), jnp.float32, -s, s),
        "w_fc": jax.random.uniform(k[5], (vocab_size, hidden_dim), jnp.float32, -s, s),
        "b_fc": jax.random.uniform(k[6], (vocab_size,), jnp.float32, -s, s),
    }


if __name__ == "__main__":
    text = "hello world"
    chars = sorted(list(set(text)))
    vocab_size = len(chars)          # 8
    embed_dim = 16
    hidden_dim = 32
    batch = 2
    seq = 8

    key = jax.random.PRNGKey(0)
    k_params, k_tok = jax.random.split(key)
    params = init_params(k_params, vocab_size, embed_dim, hidden_dim)
    tokens = jax.random.randint(k_tok, (batch, seq), 0, vocab_size, dtype=jnp.int32)

    logits = jax.jit(char_rnn_forward)(tokens, params)
    jax.block_until_ready(logits)

    # Pure-JAX reference with the same bf16 weight/activation rounding and f32 accumulation.
    def ref_forward(tokens, p):
        bf = lambda a: a.astype(jnp.bfloat16).astype(jnp.float32)
        x = bf(jnp.take(p["embed"], tokens, axis=0))          # (B, T, E)
        wih, whh, wfc = bf(p["w_ih"]), bf(p["w_hh"]), bf(p["w_fc"])
        b = (p["b_ih"] + p["b_hh"]).astype(jnp.float32)
        Bsz, Tlen, _ = x.shape
        Hd = whh.shape[0]
        h = jnp.zeros((Bsz, Hd), jnp.float32)
        for t in range(Tlen):
            h = jnp.tanh(x[:, t, :] @ wih.T + b + bf(h) @ whh.T)
        return bf(h) @ wfc.T + p["b_fc"].astype(jnp.float32)

    ref = ref_forward(tokens, params)
    assert logits.shape == (batch, vocab_size)
    assert jnp.allclose(logits, ref, atol=5e-3, rtol=5e-3), (
        f"max abs diff = {jnp.max(jnp.abs(logits - ref))}")

    print("KERNEL_OK")
</pallas_src>

<mosaic_0001>
module attributes {stable_mosaic.version = 11 : i64} {
  func.func @_char_rnn_kernel(%arg0: i32, %arg1: memref<8x8x128xbf16, #tpu.memory_space<vmem>>, %arg2: memref<128x128xbf16, #tpu.memory_space<vmem>>, %arg3: memref<128x128xbf16, #tpu.memory_space<vmem>>, %arg4: memref<1x128xf32, #tpu.memory_space<vmem>>, %arg5: memref<128x128xbf16, #tpu.memory_space<vmem>>, %arg6: memref<1x128xf32, #tpu.memory_space<vmem>>, %arg7: memref<8x128xf32, #tpu.memory_space<vmem>>, %arg8: memref<8x8x128xf32, #tpu.memory_space<vmem>>) attributes {dimension_semantics = [#tpu.dimension_semantics<parallel>], iteration_bounds = array<i64: 1>, scalar_prefetch = 0 : i64, scratch_operands = 1 : i64, tpu.core_type = #tpu.core_type<tc>, window_params = [{transform_indices = @transform_0, window_bounds = array<i64: 8, 8, 128>}, {pipeline_mode = #tpu.pipeline_mode<synchronous>, transform_indices = @transform_1, window_bounds = array<i64: 128, 128>}, {pipeline_mode = #tpu.pipeline_mode<synchronous>, transform_indices = @transform_2, window_bounds = array<i64: 128, 128>}, {pipeline_mode = #tpu.pipeline_mode<synchronous>, transform_indices = @transform_3, window_bounds = array<i64: 1, 128>}, {pipeline_mode = #tpu.pipeline_mode<synchronous>, transform_indices = @transform_4, window_bounds = array<i64: 128, 128>}, {pipeline_mode = #tpu.pipeline_mode<synchronous>, transform_indices = @transform_5, window_bounds = array<i64: 1, 128>}, {transform_indices = @transform_6, window_bounds = array<i64: 8, 128>}]} {
    %c0 = arith.constant 0 : index
    %c0_0 = arith.constant 0 : index
    %c0_1 = arith.constant 0 : index
    %0 = vector.load %arg1[%c0, %c0_0, %c0_1] : memref<8x8x128xbf16, #tpu.memory_space<vmem>>, vector<8x8x128xbf16>
    %1 = vector.shape_cast %0 : vector<8x8x128xbf16> to vector<64x128xbf16>
    %c0_2 = arith.constant 0 : index
    %c0_3 = arith.constant 0 : index
    %2 = vector.load %arg2[%c0_2, %c0_3] : memref<128x128xbf16, #tpu.memory_space<vmem>>, vector<128x128xbf16>
    %cst = arith.constant dense<0.000000e+00> : vector<64x128xf32>
    %3 = tpu.matmul %1, %2, %cst {dimension_numbers = #tpu.dot_dimension_numbers<[1], [0], [0], [1], [0, 0, 1, 1], [], []>} : vector<64x128xbf16>, vector<128x128xbf16>, vector<64x128xf32> -> vector<64x128xf32>
    %c0_4 = arith.constant 0 : index
    %c0_5 = arith.constant 0 : index
    %4 = vector.load %arg4[%c0_4, %c0_5] : memref<1x128xf32, #tpu.memory_space<vmem>>, vector<1x128xf32>
    %5 = vector.broadcast %4 : vector<1x128xf32> to vector<64x128xf32>
    %6 = arith.addf %3, %5 : vector<64x128xf32>
    %7 = vector.shape_cast %6 : vector<64x128xf32> to vector<8x8x128xf32>
    %c0_6 = arith.constant 0 : index
    %c0_7 = arith.constant 0 : index
    %c0_8 = arith.constant 0 : index
    %8 = vector.load %arg8[%c0_6, %c0_7, %c0_8] : memref<8x8x128xf32, #tpu.memory_space<vmem>>, vector<8x8x128xf32>
    tpu.vector_store %arg8[%c0_6, %c0_7, %c0_8], %7 {strides = array<i32>} : memref<8x8x128xf32, #tpu.memory_space<vmem>>, vector<8x8x128xf32>,
    %c0_9 = arith.constant 0 : index
    %c0_10 = arith.constant 0 : index
    %9 = vector.load %arg3[%c0_9, %c0_10] : memref<128x128xbf16, #tpu.memory_space<vmem>>, vector<128x128xbf16>
    %cst_11 = arith.constant 0.000000e+00 : f32
    %10 = vector.broadcast %cst_11 : f32 to vector<8x128xf32>
    %c0_12 = arith.constant 0 : index
    %c0_13 = arith.constant 0 : index
    %c0_14 = arith.constant 0 : index
    %11 = vector.load %arg8[%c0_12, %c0_13, %c0_14] : memref<8x8x128xf32, #tpu.memory_space<vmem>>, vector<1x8x128xf32>
    %12 = vector.shape_cast %11 : vector<1x8x128xf32> to vector<8x128xf32>
    %13 = arith.truncf %10 : vector<8x128xf32> to vector<8x128xbf16>
    %cst_15 = arith.constant dense<0.000000e+00> : vector<8x128xf32>
    %14 = tpu.matmul %13, %9, %cst_15 {dimension_numbers = #tpu.dot_dimension_numbers<[1], [0], [0], [1], [0, 0, 1, 1], [], []>} : vector<8x128xbf16>, vector<128x128xbf16>, vector<8x128xf32> -> vector<8x128xf32>
    %15 = arith.addf %12, %14 : vector<8x128xf32>
    %16 = math.tanh %15 : vector<8x128xf32>
    %c1 = arith.constant 1 : index
    %c0_16 = arith.constant 0 : index
    %c0_17 = arith.constant 0 : index
    %17 = vector.load %arg8[%c1, %c0_16, %c0_17] : memref<8x8x128xf32, #tpu.memory_space<vmem>>, vector<1x8x128xf32>
    %18 = vector.shape_cast %17 : vector<1x8x128xf32> to vector<8x128xf32>
    %19 = arith.truncf %16 : vector<8x128xf32> to vector<8x128xbf16>
    %cst_18 = arith.constant dense<0.000000e+00> : vector<8x128xf32>
    %20 = tpu.matmul %19, %9, %cst_18 {dimension_numbers = #tpu.dot_dimension_numbers<[1], [0], [0], [1], [0, 0, 1, 1], [], []>} : vector<8x128xbf16>, vector<128x128xbf16>, vector<8x128xf32> -> vector<8x128xf32>
    %21 = arith.addf %18, %20 : vector<8x128xf32>
    %22 = math.tanh %21 : vector<8x128xf32>
    %c2 = arith.constant 2 : index
    %c0_19 = arith.constant 0 : index
    %c0_20 = arith.constant 0 : index
    %23 = vector.load %arg8[%c2, %c0_19, %c0_20] : memref<8x8x128xf32, #tpu.memory_space<vmem>>, vector<1x8x128xf32>
    %24 = vector.shape_cast %23 : vector<1x8x128xf32> to vector<8x128xf32>
    %25 = arith.truncf %22 : vector<8x128xf32> to vector<8x128xbf16>
    %cst_21 = arith.constant dense<0.000000e+00> : vector<8x128xf32>
    %26 = tpu.matmul %25, %9, %cst_21 {dimension_numbers = #tpu.dot_dimension_numbers<[1], [0], [0], [1], [0, 0, 1, 1], [], []>} : vector<8x128xbf16>, vector<128x128xbf16>, vector<8x128xf32> -> vector<8x128xf32>
    %27 = arith.addf %24, %26 : vector<8x128xf32>
    %28 = math.tanh %27 : vector<8x128xf32>
    %c3 = arith.constant 3 : index
    %c0_22 = arith.constant 0 : index
    %c0_23 = arith.constant 0 : index
    %29 = vector.load %arg8[%c3, %c0_22, %c0_23] : memref<8x8x128xf32, #tpu.memory_space<vmem>>, vector<1x8x128xf32>
    %30 = vector.shape_cast %29 : vector<1x8x128xf32> to vector<8x128xf32>
    %31 = arith.truncf %28 : vector<8x128xf32> to vector<8x128xbf16>
    %cst_24 = arith.constant dense<0.000000e+00> : vector<8x128xf32>
    %32 = tpu.matmul %31, %9, %cst_24 {dimension_numbers = #tpu.dot_dimension_numbers<[1], [0], [0], [1], [0, 0, 1, 1], [], []>} : vector<8x128xbf16>, vector<128x128xbf16>, vector<8x128xf32> -> vector<8x128xf32>
    %33 = arith.addf %30, %32 : vector<8x128xf32>
    %34 = math.tanh %33 : vector<8x128xf32>
    %c4 = arith.constant 4 : index
    %c0_25 = arith.constant 0 : index
    %c0_26 = arith.constant 0 : index
    %35 = vector.load %arg8[%c4, %c0_25, %c0_26] : memref<8x8x128xf32, #tpu.memory_space<vmem>>, vector<1x8x128xf32>
    %36 = vector.shape_cast %35 : vector<1x8x128xf32> to vector<8x128xf32>
    %37 = arith.truncf %34 : vector<8x128xf32> to vector<8x128xbf16>
    %cst_27 = arith.constant dense<0.000000e+00> : vector<8x128xf32>
    %38 = tpu.matmul %37, %9, %cst_27 {dimension_numbers = #tpu.dot_dimension_numbers<[1], [0], [0], [1], [0, 0, 1, 1], [], []>} : vector<8x128xbf16>, vector<128x128xbf16>, vector<8x128xf32> -> vector<8x128xf32>
    %39 = arith.addf %36, %38 : vector<8x128xf32>
    %40 = math.tanh %39 : vector<8x128xf32>
    %c5 = arith.constant 5 : index
    %c0_28 = arith.constant 0 : index
    %c0_29 = arith.constant 0 : index
    %41 = vector.load %arg8[%c5, %c0_28, %c0_29] : memref<8x8x128xf32, #tpu.memory_space<vmem>>, vector<1x8x128xf32>
    %42 = vector.shape_cast %41 : vector<1x8x128xf32> to vector<8x128xf32>
    %43 = arith.truncf %40 : vector<8x128xf32> to vector<8x128xbf16>
    %cst_30 = arith.constant dense<0.000000e+00> : vector<8x128xf32>
    %44 = tpu.matmul %43, %9, %cst_30 {dimension_numbers = #tpu.dot_dimension_numbers<[1], [0], [0], [1], [0, 0, 1, 1], [], []>} : vector<8x128xbf16>, vector<128x128xbf16>, vector<8x128xf32> -> vector<8x128xf32>
    %45 = arith.addf %42, %44 : vector<8x128xf32>
    %46 = math.tanh %45 : vector<8x128xf32>
    %c6 = arith.constant 6 : index
    %c0_31 = arith.constant 0 : index
    %c0_32 = arith.constant 0 : index
    %47 = vector.load %arg8[%c6, %c0_31, %c0_32] : memref<8x8x128xf32, #tpu.memory_space<vmem>>, vector<1x8x128xf32>
    %48 = vector.shape_cast %47 : vector<1x8x128xf32> to vector<8x128xf32>
    %49 = arith.truncf %46 : vector<8x128xf32> to vector<8x128xbf16>
    %cst_33 = arith.constant dense<0.000000e+00> : vector<8x128xf32>
    %50 = tpu.matmul %49, %9, %cst_33 {dimension_numbers = #tpu.dot_dimension_numbers<[1], [0], [0], [1], [0, 0, 1, 1], [], []>} : vector<8x128xbf16>, vector<128x128xbf16>, vector<8x128xf32> -> vector<8x128xf32>
    %51 = arith.addf %48, %50 : vector<8x128xf32>
    %52 = math.tanh %51 : vector<8x128xf32>
    %c7 = arith.constant 7 : index
    %c0_34 = arith.constant 0 : index
    %c0_35 = arith.constant 0 : index
    %53 = vector.load %arg8[%c7, %c0_34, %c0_35] : memref<8x8x128xf32, #tpu.memory_space<vmem>>, vector<1x8x128xf32>
    %54 = vector.shape_cast %53 : vector<1x8x128xf32> to vector<8x128xf32>
    %55 = arith.truncf %52 : vector<8x128xf32> to vector<8x128xbf16>
    %cst_36 = arith.constant dense<0.000000e+00> : vector<8x128xf32>
    %56 = tpu.matmul %55, %9, %cst_36 {dimension_numbers = #tpu.dot_dimension_numbers<[1], [0], [0], [1], [0, 0, 1, 1], [], []>} : vector<8x128xbf16>, vector<128x128xbf16>, vector<8x128xf32> -> vector<8x128xf32>
    %57 = arith.addf %54, %56 : vector<8x128xf32>
    %58 = math.tanh %57 : vector<8x128xf32>
    %59 = arith.truncf %58 : vector<8x128xf32> to vector<8x128xbf16>
    %c0_37 = arith.constant 0 : index
    %c0_38 = arith.constant 0 : index
    %60 = vector.load %arg5[%c0_37, %c0_38] : memref<128x128xbf16, #tpu.memory_space<vmem>>, vector<128x128xbf16>
    %cst_39 = arith.constant dense<0.000000e+00> : vector<8x128xf32>
    %61 = tpu.matmul %59, %60, %cst_39 {dimension_numbers = #tpu.dot_dimension_numbers<[1], [0], [0], [1], [0, 0, 1, 1], [], []>} : vector<8x128xbf16>, vector<128x128xbf16>, vector<8x128xf32> -> vector<8x128xf32>
    %c0_40 = arith.constant 0 : index
    %c0_41 = arith.constant 0 : index
    %62 = vector.load %arg6[%c0_40, %c0_41] : memref<1x128xf32, #tpu.memory_space<vmem>>, vector<1x128xf32>
    %63 = vector.broadcast %62 : vector<1x128xf32> to vector<8x128xf32>
    %64 = arith.addf %61, %63 : vector<8x128xf32>
    %c0_42 = arith.constant 0 : index
    %c0_43 = arith.constant 0 : index
    %65 = vector.load %arg7[%c0_42, %c0_43] : memref<8x128xf32, #tpu.memory_space<vmem>>, vector<8x128xf32>
    tpu.vector_store %arg7[%c0_42, %c0_43], %64 {strides = array<i32>} : memref<8x128xf32, #tpu.memory_space<vmem>>, vector<8x128xf32>,
    return
  }
  func.func @transform_0(%arg0: i32) -> (i32, i32, i32) {
    %c0_i32 = arith.constant 0 : i32
    %c0_i32_0 = arith.constant 0 : i32
    %c0_i32_1 = arith.constant 0 : i32
    return %c0_i32, %arg0, %c0_i32_0 : i32, i32, i32
  }
  func.func @transform_1(%arg0: i32) -> (i32, i32) {
    %c0_i32 = arith.constant 0 : i32
    %c0_i32_0 = arith.constant 0 : i32
    %c0_i32_1 = arith.constant 0 : i32
    return %c0_i32, %c0_i32_0 : i32, i32
  }
  func.func @transform_2(%arg0: i32) -> (i32, i32) {
    %c0_i32 = arith.constant 0 : i32
    %c0_i32_0 = arith.constant 0 : i32
    %c0_i32_1 = arith.constant 0 : i32
    return %c0_i32, %c0_i32_0 : i32, i32
  }
  func.func @transform_3(%arg0: i32) -> (i32, i32) {
    %c0_i32 = arith.constant 0 : i32
    %c0_i32_0 = arith.constant 0 : i32
    %c0_i32_1 = arith.constant 0 : i32
    return %c0_i32, %c0_i32_0 : i32, i32
  }
  func.func @transform_4(%arg0: i32) -> (i32, i32) {
    %c0_i32 = arith.constant 0 : i32
    %c0_i32_0 = arith.constant 0 : i32
    %c0_i32_1 = arith.constant 0 : i32
    return %c0_i32, %c0_i32_0 : i32, i32
  }
  func.func @transform_5(%arg0: i32) -> (i32, i32) {
    %c0_i32 = arith.constant 0 : i32
    %c0_i32_0 = arith.constant 0 : i32
    %c0_i32_1 = arith.constant 0 : i32
    return %c0_i32, %c0_i32_0 : i32, i32
  }
  func.func @transform_6(%arg0: i32) -> (i32, i32) {
    %c0_i32 = arith.constant 0 : i32
    %c0_i32_0 = arith.constant 0 : i32
    return %arg0, %c0_i32 : i32, i32
  }
}

</mosaic_0001>

<bundles_post_ra>
// kernel: char_rnn_forward.1
= control target key start
LH: loop header
LB: loop body
LE: loop exit
PB: predicated region body
PF: predicated region fallthrough
CT: control target
= control target key end

     0   :  { %v613_v17 = vmov 0   ;;  %s802_s1 = inlined_call_operand.vmem [shape: bf16[128,128], index: 1, kind: input, shape index: {}]   ;;  %s803_s2 = inlined_call_operand.vmem [shape: bf16[128,128], index: 2, kind: input, shape index: {}]   ;;  %s804_s3 = inlined_call_operand.vmem [shape: f32[1,128], index: 3, kind: input, shape index: {}]   ;;  %s805_s0 = inlined_call_operand.vmem [shape: bf16[8,8,128], index: 0, kind: input, shape index: {}]   ;;  %s806_s4 = inlined_call_operand.vmem [shape: bf16[128,128], index: 4, kind: input, shape index: {}]   ;;  %s807_s5 = inlined_call_operand.vmem [shape: f32[1,128], index: 5, kind: input, shape index: {}]   ;;  %s808_s6 = inlined_call_operand.vmem [shape: f32[8,128], index: 6, kind: output, shape index: {}]  }
   0x1   :  { %v577_v0 = vld [vmem:[%s802_s1 + $0x38] sm:$0xff]  ;;  %v576_v2 = vld [vmem:[%s802_s1 + $0x30] sm:$0xff]  ;;  %v575_v4 = vld [vmem:[%s802_s1 + $0x28] sm:$0xff] }
   0x2   :  { %v655_v1 = vld [vmem:[%s803_s2 + $0x38] sm:$0xff]  ;;  %124 = vmatpush.bf16.msra.mxu0 %v577_v0  ;;  %v664_v3 = vld [vmem:[%s803_s2 + $0x30] sm:$0xff]  ;;  %v675_v5 = vld [vmem:[%s803_s2 + $0x28] sm:$0xff] }
   0x3   :  { %226 = vmatpush.bf16.msra.mxu1 %v655_v1  ;;  %244 = vmatpush.bf16.msra.mxu2 %v655_v1  ;;  %v574_v6 = vld [vmem:[%s802_s1 + $0x20] sm:$0xff]  ;;  %v573_v8 = vld [vmem:[%s802_s1 + $0x18] sm:$0xff]  ;;  %v572_v10 = vld [vmem:[%s802_s1 + $0x10] sm:$0xff] }
   0x4   :  { %262 = vmatpush.bf16.msra.mxu3 %v655_v1  ;;  %v686_v7 = vld [vmem:[%s803_s2 + $0x20] sm:$0xff]  ;;  %v697_v9 = vld [vmem:[%s803_s2 + $0x18] sm:$0xff]  ;;  %v580_v11 = vld [vmem:[%s803_s2 + $0x10] sm:$0xff] }
   0x5   :  { %v571_v12 = vld [vmem:[%s802_s1 + $0x8] sm:$0xff]  ;;  %v570_v14 = vld [vmem:[%s802_s1] sm:$0xff]  ;;  %v568_v41 = vld [vmem:[%s805_s0 + $0x10] sm:$0xff] }
   0x6   :  { %125 = vmatpush.bf16.msra.mxu0 %v576_v2  ;;  %v579_v13 = vld [vmem:[%s803_s2 + $0x8] sm:$0xff]  ;;  %v578_v15 = vld [vmem:[%s803_s2] sm:$0xff]  ;;  %v569_v49 = vld [vmem:[%s805_s0 + $0x18] sm:$0xff] }
   0x7   :  { %227 = vmatpush.bf16.msra.mxu1 %v664_v3  ;;  %245 = vmatpush.bf16.msra.mxu2 %v664_v3  ;;  %v566_v16 = vld [vmem:[%s805_s0] sm:$0xff]  ;;  %v567_v26 = vld [vmem:[%s805_s0 + $0x8] sm:$0xff]  ;;  %v593_v0 = vld [vmem:[%s806_s4 + $0x38] sm:$0xff] }
   0x8   :  { %263 = vmatpush.bf16.msra.mxu3 %v664_v3  ;;  %v753_v18 = vld [vmem:[%s804_s3] ss:$0 sm:$0xff]  ;;  %v592_v2 = vld [vmem:[%s806_s4 + $0x30] sm:$0xff] }
   0xa   :  { %126 = vmatpush.bf16.msra.mxu0 %v575_v4  ;;  %v590_v4 = vld [vmem:[%s806_s4 + $0x20] sm:$0xff] }
   0xb   :  { %228 = vmatpush.bf16.msra.mxu1 %v675_v5  ;;  %246 = vmatpush.bf16.msra.mxu2 %v675_v5 }
   0xc   :  { %264 = vmatpush.bf16.msra.mxu3 %v675_v5 }
   0xe   :  { %127 = vmatpush.bf16.msra.mxu0 %v574_v6  ;;  %v589_v6 = vld [vmem:[%s806_s4 + $0x18] sm:$0xff] }
   0xf   :  { %229 = vmatpush.bf16.msra.mxu1 %v686_v7  ;;  %247 = vmatpush.bf16.msra.mxu2 %v686_v7 }
  0x10   :  { %265 = vmatpush.bf16.msra.mxu3 %v686_v7 }
  0x12   :  { %128 = vmatpush.bf16.msra.mxu0 %v573_v8 }
  0x13   :  { %230 = vmatpush.bf16.msra.mxu1 %v697_v9  ;;  %248 = vmatpush.bf16.msra.mxu2 %v697_v9 }
  0x14   :  { %266 = vmatpush.bf16.msra.mxu3 %v697_v9 }
  0x16   :  { %129 = vmatpush.bf16.msra.mxu0 %v572_v10 }
  0x17   :  { %231 = vmatpush.bf16.msra.mxu1 %v580_v11  ;;  %249 = vmatpush.bf16.msra.mxu2 %v580_v11 }
  0x18   :  { %267 = vmatpush.bf16.msra.mxu3 %v580_v11 }
  0x1a   :  { %130 = vmatpush.bf16.msra.mxu0 %v571_v12 }
  0x1b   :  { %232 = vmatpush.bf16.msra.mxu1 %v579_v13  ;;  %250 = vmatpush.bf16.msra.mxu2 %v579_v13 }
  0x1c   :  { %268 = vmatpush.bf16.msra.mxu3 %v579_v13 }
  0x1e   :  { %131 = vmatpush.bf16.msra.mxu0 %v570_v14  ;;  %v587_v14 = vld [vmem:[%s806_s4 + $0x8] sm:$0xff] }
  0x1f   :  { %233 = vmatpush.bf16.msra.mxu1 %v578_v15  ;;  %251 = vmatpush.bf16.msra.mxu2 %v578_v15 }
  0x20   :  { %269 = vmatpush.bf16.msra.mxu3 %v578_v15 }
  0x21   :  { %132 = vmatmul.bf16.vlgmr.msra.gmra.mxu0 %v566_v16 }
  0x22   :  { %234 = vmatmul.bf16.vlgmr.msra.gmra.mxu1 %v613_v17  ;;  %334 = vmatpush.bf16.msrb.mxu0 %v655_v1 }
  0x23   :  { %280 = vmatpush.bf16.msrb.mxu1 %v655_v1  ;;  %298 = vmatpush.bf16.msrb.mxu2 %v655_v1 }
  0x24   :  { %316 = vmatpush.bf16.msrb.mxu3 %v655_v1 }
  0x26   :  { %335 = vmatpush.bf16.msrb.mxu0 %v664_v3 }
  0x27   :  { %281 = vmatpush.bf16.msrb.mxu1 %v664_v3  ;;  %299 = vmatpush.bf16.msrb.mxu2 %v664_v3 }
  0x28   :  { %317 = vmatpush.bf16.msrb.mxu3 %v664_v3 }
  0x2a   :  { %336 = vmatpush.bf16.msrb.mxu0 %v675_v5 }
  0x2b   :  { %282 = vmatpush.bf16.msrb.mxu1 %v675_v5  ;;  %300 = vmatpush.bf16.msrb.mxu2 %v675_v5 }
  0x2c   :  { %318 = vmatpush.bf16.msrb.mxu3 %v675_v5 }
  0x2e   :  { %337 = vmatpush.bf16.msrb.mxu0 %v686_v7 }
  0x2f   :  { %283 = vmatpush.bf16.msrb.mxu1 %v686_v7  ;;  %301 = vmatpush.bf16.msrb.mxu2 %v686_v7 }
  0x30   :  { %319 = vmatpush.bf16.msrb.mxu3 %v686_v7 }
  0x31   :  { %137 = vmatmul.bf16.gmra.mxu0 %v567_v26 }
  0x32   :  { %338 = vmatpush.bf16.msrb.mxu0 %v697_v9 }
  0x33   :  { %284 = vmatpush.bf16.msrb.mxu1 %v697_v9  ;;  %302 = vmatpush.bf16.msrb.mxu2 %v697_v9 }
  0x34   :  { %320 = vmatpush.bf16.msrb.mxu3 %v697_v9 }
  0x36   :  { %339 = vmatpush.bf16.msrb.mxu0 %v580_v11 }
  0x37   :  { %285 = vmatpush.bf16.msrb.mxu1 %v580_v11  ;;  %303 = vmatpush.bf16.msrb.mxu2 %v580_v11 }
  0x38   :  { %321 = vmatpush.bf16.msrb.mxu3 %v580_v11 }
  0x3a   :  { %340 = vmatpush.bf16.msrb.mxu0 %v579_v13 }
  0x3b   :  { %286 = vmatpush.bf16.msrb.mxu1 %v579_v13  ;;  %304 = vmatpush.bf16.msrb.mxu2 %v579_v13 }
  0x3c   :  { %322 = vmatpush.bf16.msrb.mxu3 %v579_v13 }
  0x3e   :  { %341 = vmatpush.bf16.msrb.mxu0 %v578_v15 }
  0x3f   :  { %287 = vmatpush.bf16.msrb.mxu1 %v578_v15  ;;  %305 = vmatpush.bf16.msrb.mxu2 %v578_v15 }
  0x40   :  { %323 = vmatpush.bf16.msrb.mxu3 %v578_v15 }
  0x41   :  { %142 = vmatmul.bf16.gmra.mxu0 %v568_v41 }
  0x43   :  { %352 = vmatpush.bf16.msra.mxu1 %v655_v1 }
  0x47   :  { %353 = vmatpush.bf16.msra.mxu1 %v664_v3  ;;  %v591_v3 = vld [vmem:[%s806_s4 + $0x28] sm:$0xff] }
  0x4b   :  { %354 = vmatpush.bf16.msra.mxu1 %v675_v5 }
  0x4f   :  { %355 = vmatpush.bf16.msra.mxu1 %v686_v7 }
  0x51   :  { %147 = vmatmul.bf16.gmra.mxu0 %v569_v49 }
  0x53   :  { %356 = vmatpush.bf16.msra.mxu1 %v697_v9 }
  0x57   :  { %357 = vmatpush.bf16.msra.mxu1 %v580_v11 }
  0x5b   :  { %358 = vmatpush.bf16.msra.mxu1 %v579_v13  ;;  %v588_v13 = vld [vmem:[%s806_s4 + $0x10] sm:$0xff] }
  0x5f   :  { %359 = vmatpush.bf16.msra.mxu1 %v578_v15  ;;  %v586_v15 = vld [vmem:[%s806_s4] sm:$0xff] }
  0x9e   :  { %v133_v19 = vpop.f32.mrf.mxu0 }
  0x9f   :  { %v235_v20 = vpop.f32.mrf.mxu1  ;;  %v134_v21 = vadd.f32 %v753_v18, %v133_v19 }
  0xa1   :  { %v239_v22 = vadd.f32 %v235_v20, %v134_v21 }
  0xa3   :  { %597 = vtanh.f32 %v239_v22 }
  0xa6   :  { %v135_v27 = vpop.f32.mrf.mxu0 }
  0xa7   :  { %v237_v23 = vpop.f32.mrf.mxu1  ;;  %v136_v28 = vadd.f32 %v753_v18, %v135_v27 }
  0xa8   :  { %v596_v23 = vld [vmem:[%s807_s5] ss:$0 sm:$0xff] }
  0xa9   :  { %v598_v24 = vpop.eup %597 }
  0xaa   :  { %v243_v25 = vpack.c.bf16 %v598_v24, %v598_v24 }
  0xac   :  { %252 = vmatmul.bf16.vlgmr.msra.gmra.mxu2 %v243_v25 }
  0xad   :  { %436 = vmatpush.bf16.msra.mxu2 %v593_v0 }
  0xae   :  { %v138_v34 = vpop.f32.mrf.mxu0 }
  0xaf   :  { %v139_v35 = vadd.f32 %v753_v18, %v138_v34 }
  0xb1   :  { %437 = vmatpush.bf16.msra.mxu2 %v592_v2 }
  0xb5   :  { %438 = vmatpush.bf16.msra.mxu2 %v591_v3 }
  0xb6   :  { %v140_v42 = vpop.f32.mrf.mxu0 }
  0xb7   :  { %v141_v43 = vadd.f32 %v753_v18, %v140_v42 }
  0xb9   :  { %439 = vmatpush.bf16.msra.mxu2 %v590_v4 }
  0xbd   :  { %440 = vmatpush.bf16.msra.mxu2 %v589_v6 }
  0xbe   :  { %v143_v50 = vpop.f32.mrf.mxu0 }
  0xbf   :  { %v144_v51 = vadd.f32 %v753_v18, %v143_v50 }
  0xc1   :  { %441 = vmatpush.bf16.msra.mxu2 %v588_v13 }
  0xc5   :  { %442 = vmatpush.bf16.msra.mxu2 %v587_v14 }
  0xc6   :  { %v145_v57 = vpop.f32.mrf.mxu0 }
  0xc7   :  { %v146_v58 = vadd.f32 %v753_v18, %v145_v57 }
  0xc9   :  { %443 = vmatpush.bf16.msra.mxu2 %v586_v15 }
  0xce   :  { %v148_v1 = vpop.f32.mrf.mxu0 }
  0xcf   :  { %v149_v7 = vadd.f32 %v753_v18, %v148_v1 }
  0xd6   :  { %v150_v5 = vpop.f32.mrf.mxu0 }
  0xd7   :  { %v151_v16 = vadd.f32 %v753_v18, %v150_v5 }
 0x12f   :  { %v253_v29 = vpop.f32.mrf.mxu2 }
 0x130   :  { %v257_v30 = vadd.f32 %v253_v29, %v136_v28 }
 0x132   :  { %599 = vtanh.f32 %v257_v30 }
 0x137   :  { %v255_v31 = vpop.f32.mrf.mxu2 }
 0x138   :  { %v600_v32 = vpop.eup %599 }
 0x139   :  { %v261_v33 = vpack.c.bf16 %v600_v32, %v600_v32 }
 0x13b   :  { %270 = vmatmul.bf16.vlgmr.msra.gmra.mxu3 %v261_v33 }
 0x1be   :  { %v271_v36 = vpop.f32.mrf.mxu3 }
 0x1bf   :  { %v275_v37 = vadd.f32 %v271_v36, %v139_v35 }
 0x1c1   :  { %601 = vtanh.f32 %v275_v37 }
 0x1c6   :  { %v273_v38 = vpop.f32.mrf.mxu3 }
 0x1c7   :  { %v602_v39 = vpop.eup %601 }
 0x1c8   :  { %v279_v40 = vpack.c.bf16 %v602_v39, %v602_v39 }
 0x1ca   :  { %288 = vmatmul.bf16.vlgmr.msrb.gmra.mxu1 %v279_v40 }
 0x247   :  { %v289_v44 = vpop.f32.mrf.mxu1 }
 0x248   :  { %v293_v45 = vadd.f32 %v289_v44, %v141_v43 }
 0x24a   :  { %603 = vtanh.f32 %v293_v45 }
 0x24f   :  { %v291_v46 = vpop.f32.mrf.mxu1 }
 0x250   :  { %v604_v47 = vpop.eup %603 }
 0x251   :  { %v297_v48 = vpack.c.bf16 %v604_v47, %v604_v47 }
 0x253   :  { %306 = vmatmul.bf16.vlgmr.msrb.gmra.mxu2 %v297_v48 }
 0x2d6   :  { %v307_v52 = vpop.f32.mrf.mxu2 }
 0x2d7   :  { %v311_v53 = vadd.f32 %v307_v52, %v144_v51 }
 0x2d9   :  { %605 = vtanh.f32 %v311_v53 }
 0x2de   :  { %v309_v54 = vpop.f32.mrf.mxu2 }
 0x2df   :  { %v606_v55 = vpop.eup %605 }
 0x2e0   :  { %v315_v56 = vpack.c.bf16 %v606_v55, %v606_v55 }
 0x2e2   :  { %324 = vmatmul.bf16.vlgmr.msrb.gmra.mxu3 %v315_v56 }
 0x365   :  { %v325_v59 = vpop.f32.mrf.mxu3 }
 0x366   :  { %v329_v60 = vadd.f32 %v325_v59, %v146_v58 }
 0x368   :  { %607 = vtanh.f32 %v329_v60 }
 0x36d   :  { %v327_v61 = vpop.f32.mrf.mxu3 }
 0x36e   :  { %v608_v62 = vpop.eup %607 }
 0x36f   :  { %v333_v63 = vpack.c.bf16 %v608_v62, %v608_v62 }
 0x371   :  { %342 = vmatmul.bf16.vlgmr.msrb.gmra.mxu0 %v333_v63 }
 0x3ee   :  { %v343_v8 = vpop.f32.mrf.mxu0 }
 0x3ef   :  { %v347_v9 = vadd.f32 %v343_v8, %v149_v7 }
 0x3f1   :  { %609 = vtanh.f32 %v347_v9 }
 0x3f6   :  { %v345_v10 = vpop.f32.mrf.mxu0 }
 0x3f7   :  { %v610_v11 = vpop.eup %609 }
 0x3f8   :  { %v351_v12 = vpack.c.bf16 %v610_v11, %v610_v11 }
 0x3fa   :  { %360 = vmatmul.bf16.vlgmr.msra.gmra.mxu1 %v351_v12 }
 0x477   :  { %v361_v17 = vpop.f32.mrf.mxu1 }
 0x478   :  { %v365_v19 = vadd.f32 %v361_v17, %v151_v16 }
 0x47a   :  { %611 = vtanh.f32 %v365_v19 }
 0x47f   :  { %v363_v20 = vpop.f32.mrf.mxu1 }
 0x480   :  { %v612_v21 = vpop.eup %611 }
 0x481   :  { %v367_v22 = vpack.c.bf16 %v612_v21, %v612_v21 }
 0x483   :  { %444 = vmatmul.bf16.vlgmr.msra.gmra.mxu2 %v367_v22 }
 0x506   :  { %v445_v24 = vpop.f32.mrf.mxu2 }
 0x507   :  { %v446_v25 = vadd.f32 %v596_v23, %v445_v24 }
 0x509   :  { %449 = vst [vmem:[%s808_s6] sm:$0xff] %v446_v25 }
 0x50e   :  { %v447_v26 = vpop.f32.mrf.mxu2 }

</bundles_post_ra>
